<compile_context>
chip_gen: v7x
topology: tpu7x:2x2x1
jax: 0.10.0
libtpu: 0.0.40
codegen_flags: <defaults>
</compile_context>

<pallas_src>
import functools

import jax
import jax.numpy as jnp
from jax.experimental import pallas as pl
from jax.experimental.pallas import tpu as pltpu


def _softplus(z):
    # softplus(z) = -logsigmoid(-z), numerically stable.
    return jnp.maximum(z, 0.0) + jnp.log1p(jnp.exp(-jnp.abs(z)))


def _gp_kernel_margin(x_ref, m_ref, rel_ref, loss_ref, *, H, inv_scale):
    x = x_ref[...]                                   # (4H, tile) f32
    ce, co = x[0:H], x[H:2 * H]                      # t_k already folded into these
    re_, ro = x[2 * H:3 * H], x[3 * H:4 * H]
    # result[b] = sum_k t_k*(c[b,2k]*r[b,2k+1] - c[b,2k+1]*r[b,2k])   (pure VPU)
    result = jnp.sum(ce * ro - co * re_, axis=0, keepdims=True)       # (1, tile)
    rel = (result - m_ref[...]) * inv_scale
    rel_ref[...] = rel                               # lane-dense store
    loss_ref[...] = _softplus(-rel)                  # -logsigmoid(rel), per sample


def _gp_kernel_nomargin(x_ref, rel_ref, loss_ref, *, H, inv_scale):
    x = x_ref[...]
    ce, co = x[0:H], x[H:2 * H]
    re_, ro = x[2 * H:3 * H], x[3 * H:4 * H]
    result = jnp.sum(ce * ro - co * re_, axis=0, keepdims=True)
    rel = result * inv_scale
    rel_ref[...] = rel
    loss_ref[...] = _softplus(-rel)


def gp_preference_loss(chosen_reward, reject_reward, taus, margin=None,
                       scale=1.0, *, max_lane_tile=8192):
    """chosen_reward/reject_reward: (B, D); taus: (D//2,); margin: (B,) or None.

    Returns (loss_scalar_f32, relative_score_f32[B]) matching
    HighDimGeneralPreferenceLearnableTauLoss.forward.
    """
    B, D = chosen_reward.shape
    assert D % 2 == 0, "value_head_dim must be even"
    H = D // 2

    # Tile selection: one block covering the whole (padded) batch when possible.
    if B <= max_lane_tile:
        lane_tile = pl.cdiv(B, 128) * 128
    else:
        lane_tile = max_lane_tile
    b_pad = pl.cdiv(B, lane_tile) * lane_tile
    pad = b_pad - B

    # Per-pair weights 1/max(-logsigmoid(tau_k), 0.01)
    # (== create_skew_symmetric_block_matrix, keeping only the D/2 weights).
    t = 1.0 / jnp.maximum(-jax.nn.log_sigmoid(taus.astype(jnp.float32)), 0.01)  # (H,)

    c = jnp.pad(chosen_reward.astype(jnp.float32), ((0, pad), (0, 0)))
    r = jnp.pad(reject_reward.astype(jnp.float32), ((0, pad), (0, 0)))

    # Pack [t*c_even ; t*c_odd ; r_even ; r_odd] along the sublane axis,
    # batch on the lane axis.  Single concatenate + transpose pass.
    c3 = c.reshape(b_pad, H, 2)
    r3 = r.reshape(b_pad, H, 2)
    packed = jnp.concatenate(
        [c3[:, :, 0] * t, c3[:, :, 1] * t, r3[:, :, 0], r3[:, :, 1]],
        axis=1).T                                       # (4H, b_pad)

    grid = (b_pad // lane_tile,)
    in_specs = [pl.BlockSpec((4 * H, lane_tile), lambda i: (0, i))]
    args = [packed]
    if margin is not None:
        m2 = jnp.pad(margin.astype(jnp.float32), (0, pad)).reshape(1, b_pad)
        in_specs.append(pl.BlockSpec((1, lane_tile), lambda i: (0, i)))
        args.append(m2)
        kernel = functools.partial(_gp_kernel_margin, H=H,
                                   inv_scale=float(1.0 / scale))
    else:
        kernel = functools.partial(_gp_kernel_nomargin, H=H,
                                   inv_scale=float(1.0 / scale))

    # VMEM budget: double-buffered packed input + margin + 2 outputs, with headroom.
    block_bytes = (4 * H + 3) * lane_tile * 4
    vmem_limit = min(128 << 20, max(4 * block_bytes, 16 << 20))

    rel_pad, loss_row = pl.pallas_call(
        kernel,
        out_shape=(jax.ShapeDtypeStruct((1, b_pad), jnp.float32),   # relative_score
                   jax.ShapeDtypeStruct((1, b_pad), jnp.float32)),  # per-sample loss
        grid_spec=pltpu.PrefetchScalarGridSpec(
            num_scalar_prefetch=0,
            grid=grid,
            in_specs=in_specs,
            out_specs=[pl.BlockSpec((1, lane_tile), lambda i: (0, i)),
                       pl.BlockSpec((1, lane_tile), lambda i: (0, i))],
        ),
        compiler_params=pltpu.CompilerParams(
            dimension_semantics=("parallel",),
            vmem_limit_bytes=vmem_limit,
        ),
    )(*args)

    # Final tiny reduction in JAX (padding lanes sliced off -> no in-kernel mask).
    loss = jnp.sum(loss_row[0, :B]) / B
    return loss, rel_pad[0, :B]


def gp_preference_loss_ref(chosen_reward, reject_reward, taus, margin=None, scale=1.0):
    """Pure-JAX reference mirroring the PyTorch module exactly."""
    B, D = chosen_reward.shape
    t = 1.0 / jnp.maximum(-jax.nn.log_sigmoid(taus.astype(jnp.float32)), 0.01)
    R = jnp.zeros((D, D), jnp.float32)
    even = jnp.arange(0, D, 2)
    odd = even + 1
    R = R.at[even, odd].set(-t)
    R = R.at[odd, even].set(t)
    transformed = chosen_reward.astype(jnp.float32) @ R.T
    result = jnp.sum(transformed * reject_reward.astype(jnp.float32), axis=-1)
    if margin is not None:
        rel = (result - margin.astype(jnp.float32)) / scale
    else:
        rel = result / scale
    loss = jnp.mean(-jax.nn.log_sigmoid(rel))
    return loss, rel


if __name__ == "__main__":
    # Small preference-RM shapes: batch=200 (exercises lane padding),
    # value_head_dim=4 (module default), init_tau=2.25.
    B, D = 200, 4
    key = jax.random.PRNGKey(0)
    k1, k2, k3, k4 = jax.random.split(key, 4)

    chosen = jax.random.normal(k1, (B, D), dtype=jnp.float32)
    reject = jax.random.normal(k2, (B, D), dtype=jnp.float32)
    taus = jnp.full((D // 2,), 2.25, jnp.float32) \
        + 0.1 * jax.random.normal(k3, (D // 2,), dtype=jnp.float32)
    margin = 0.5 * jax.random.normal(k4, (B,), dtype=jnp.float32)

    # Path 1: margin provided, single-block grid=(1,).
    loss, rel = gp_preference_loss(chosen, reject, taus, margin=margin, scale=1.0)
    loss = jax.block_until_ready(loss)
    rel = jax.block_until_ready(rel)
    loss_ref, rel_ref = gp_preference_loss_ref(chosen, reject, taus, margin=margin, scale=1.0)
    assert jnp.allclose(loss, loss_ref, rtol=1e-5, atol=1e-5), (loss, loss_ref)
    assert jnp.allclose(rel, rel_ref, rtol=1e-5, atol=1e-5), "relative_score mismatch"

    # Path 2: margin=None, non-unit scale.
    loss2, rel2 = gp_preference_loss(chosen, reject, taus, margin=None, scale=2.0)
    loss2 = jax.block_until_ready(loss2)
    rel2 = jax.block_until_ready(rel2)
    loss2_ref, rel2_ref = gp_preference_loss_ref(chosen, reject, taus, margin=None, scale=2.0)
    assert jnp.allclose(loss2, loss2_ref, rtol=1e-5, atol=1e-5), (loss2, loss2_ref)
    assert jnp.allclose(rel2, rel2_ref, rtol=1e-5, atol=1e-5), "relative_score mismatch (no margin)"

    # Path 3: force a multi-tile grid to exercise the tiled/parallel path.
    loss3, rel3 = gp_preference_loss(chosen, reject, taus, margin=margin, scale=1.0,
                                     max_lane_tile=128)
    loss3 = jax.block_until_ready(loss3)
    rel3 = jax.block_until_ready(rel3)
    assert jnp.allclose(loss3, loss_ref, rtol=1e-5, atol=1e-5), (loss3, loss_ref)
    assert jnp.allclose(rel3, rel_ref, rtol=1e-5, atol=1e-5), "relative_score mismatch (tiled)"

    print("KERNEL_OK")
</pallas_src>

<mosaic_0001>
module attributes {stable_mosaic.version = 11 : i64} {
  func.func @_gp_kernel_margin(%arg0: i32, %arg1: memref<8x256xf32, #tpu.memory_space<vmem>>, %arg2: memref<1x256xf32, #tpu.memory_space<vmem>>, %arg3: memref<1x256xf32, #tpu.memory_space<vmem>>, %arg4: memref<1x256xf32, #tpu.memory_space<vmem>>) attributes {dimension_semantics = [#tpu.dimension_semantics<parallel>], iteration_bounds = array<i64: 1>, scalar_prefetch = 0 : i64, scratch_operands = 0 : i64, tpu.core_type = #tpu.core_type<tc>, window_params = [{transform_indices = @transform_0, window_bounds = array<i64: 8, 256>}, {transform_indices = @transform_1, window_bounds = array<i64: 1, 256>}, {transform_indices = @transform_2, window_bounds = array<i64: 1, 256>}, {transform_indices = @transform_3, window_bounds = array<i64: 1, 256>}]} {
    %c0 = arith.constant 0 : index
    %c0_0 = arith.constant 0 : index
    %0 = vector.load %arg1[%c0, %c0_0] : memref<8x256xf32, #tpu.memory_space<vmem>>, vector<8x256xf32>
    %1 = vector.extract_strided_slice %0 {offsets = [0, 0], sizes = [2, 256], strides = [1, 1]} : vector<8x256xf32> to vector<2x256xf32>
    %2 = vector.extract_strided_slice %0 {offsets = [2, 0], sizes = [2, 256], strides = [1, 1]} : vector<8x256xf32> to vector<2x256xf32>
    %3 = vector.extract_strided_slice %0 {offsets = [4, 0], sizes = [2, 256], strides = [1, 1]} : vector<8x256xf32> to vector<2x256xf32>
    %4 = vector.extract_strided_slice %0 {offsets = [6, 0], sizes = [2, 256], strides = [1, 1]} : vector<8x256xf32> to vector<2x256xf32>
    %5 = arith.mulf %1, %4 : vector<2x256xf32>
    %6 = arith.mulf %2, %3 : vector<2x256xf32>
    %7 = arith.subf %5, %6 : vector<2x256xf32>
    %cst = arith.constant dense<0.000000e+00> : vector<256xf32>
    %8 = vector.multi_reduction <add>, %7, %cst [0] : vector<2x256xf32> to vector<256xf32>
    %9 = vector.shape_cast %8 : vector<256xf32> to vector<1x256xf32>
    %c0_1 = arith.constant 0 : index
    %c0_2 = arith.constant 0 : index
    %10 = vector.load %arg2[%c0_1, %c0_2] : memref<1x256xf32, #tpu.memory_space<vmem>>, vector<1x256xf32>
    %11 = arith.subf %9, %10 : vector<1x256xf32>
    %cst_3 = arith.constant 1.000000e+00 : f32
    %12 = vector.broadcast %cst_3 : f32 to vector<1x256xf32>
    %13 = arith.mulf %11, %12 : vector<1x256xf32>
    %c0_4 = arith.constant 0 : index
    %c0_5 = arith.constant 0 : index
    %14 = vector.load %arg3[%c0_4, %c0_5] : memref<1x256xf32, #tpu.memory_space<vmem>>, vector<1x256xf32>
    tpu.vector_store %arg3[%c0_4, %c0_5], %13 {strides = array<i32>} : memref<1x256xf32, #tpu.memory_space<vmem>>, vector<1x256xf32>,
    %cst_6 = arith.constant 0.000000e+00 : f32
    %15 = vector.broadcast %cst_6 : f32 to vector<1x256xf32>
    %16 = arith.subf %15, %13 : vector<1x256xf32>
    %cst_7 = arith.constant 0.000000e+00 : f32
    %17 = vector.broadcast %cst_7 : f32 to vector<1x256xf32>
    %18 = arith.maximumf %16, %17 : vector<1x256xf32>
    %19 = math.absf %16 : vector<1x256xf32>
    %cst_8 = arith.constant 0.000000e+00 : f32
    %20 = vector.broadcast %cst_8 : f32 to vector<1x256xf32>
    %21 = arith.subf %20, %19 : vector<1x256xf32>
    %22 = math.exp %21 : vector<1x256xf32>
    %23 = math.log1p %22 : vector<1x256xf32>
    %24 = arith.addf %18, %23 : vector<1x256xf32>
    %c0_9 = arith.constant 0 : index
    %c0_10 = arith.constant 0 : index
    %25 = vector.load %arg4[%c0_9, %c0_10] : memref<1x256xf32, #tpu.memory_space<vmem>>, vector<1x256xf32>
    tpu.vector_store %arg4[%c0_9, %c0_10], %24 {strides = array<i32>} : memref<1x256xf32, #tpu.memory_space<vmem>>, vector<1x256xf32>,
    return
  }
  func.func @transform_0(%arg0: i32) -> (i32, i32) {
    %c0_i32 = arith.constant 0 : i32
    %c0_i32_0 = arith.constant 0 : i32
    return %c0_i32, %arg0 : i32, i32
  }
  func.func @transform_1(%arg0: i32) -> (i32, i32) {
    %c0_i32 = arith.constant 0 : i32
    %c0_i32_0 = arith.constant 0 : i32
    return %c0_i32, %arg0 : i32, i32
  }
  func.func @transform_2(%arg0: i32) -> (i32, i32) {
    %c0_i32 = arith.constant 0 : i32
    %c0_i32_0 = arith.constant 0 : i32
    return %c0_i32, %arg0 : i32, i32
  }
  func.func @transform_3(%arg0: i32) -> (i32, i32) {
    %c0_i32 = arith.constant 0 : i32
    %c0_i32_0 = arith.constant 0 : i32
    return %c0_i32, %arg0 : i32, i32
  }
}

</mosaic_0001>

<bundles_post_ra>
// kernel: tpu_custom_call.1
= control target key start
LH: loop header
LB: loop body
LE: loop exit
PB: predicated region body
PF: predicated region fallthrough
CT: control target
= control target key end

     0   :  { %9 = vsyncpa [#allocation3], 0  ;;  %s344_s0 = inlined_call_operand.hbm [shape: f32[8,256], index: 0, kind: input, shape index: {}]   ;;  %s345_s1 = inlined_call_operand.vmem [shape: f32[1,256], index: 1, kind: input, shape index: {}]   ;;  %s346_s2 = inlined_call_operand.hbm [shape: f32[1,256], index: 2, kind: output, shape index: {0}]   ;;  %s347_s3 = inlined_call_operand.hbm [shape: f32[1,256], index: 3, kind: output, shape index: {1}]  }
   0x1   :  { %10 = vsyncpa [#allocation4], 0 }
   0x2   :  { %11 = vsyncpa [#allocation7], 0  ;;  %s267_s12 = smov [#allocation2]   ;;  %s195_s16 = scalar_lea.hbm %s344_s0, 256 }
   0x3   :  { %s18_s13 = sshll.u32 %s267_s12, 4  ;;  %p196_p0 = scmp.ne.s32.totalorder %s344_s0, %s195_s16  ;;  %s19_s13 = int_to_ptr.vmem [resolvable:$true] %s18_s13 }
   0x4   :  { %p199_p1 = scmp.lt.u32.totalorder %s195_s16, %s344_s0 }
   0x6   :  { %p201_p2 = pnand %p199_p1, %p196_p0 }
   0x8   :  { %204 = shalt.err (!%p201_p2)
}
   0x9   :  { %s205_s21 = scalar_lea.vmem %s19_s13, 256  ;;  %p210_p4 = scmp.lt.s32.totalorder %s19_s13, %s19_s13 }
   0xa   :  { %p206_p3 = scmp.ne.s32.totalorder %s19_s13, %s205_s21  ;;  %p211_p5 = scmp.lt.s32.totalorder %s205_s21, %s205_s21 }
   0xc   :  { %p212_p6 = por %p211_p5, %p210_p4 }
   0xe   :  { %p213_p7 = pnand %p212_p6, %p206_p3 }
  0x10   :  { %216 = shalt.err (!%p213_p7)
}
  0x11   :  { %21 = dma.hbm_to_vmem [thread:$0]  %s344_s0, 256, %s19_s13, [#allocation3]  }
  0x12   :  { %261 = dma.done.wait [#allocation3], 256  }
  0x13   :  { %262 = vsyncadd [#allocation3], 4294967040  ;;  %v27_v0 = vld [vmem:[#allocation2] sm:$0xff]  ;;  %v28_v1 = vld [vmem:[#allocation2 + $0x8] sm:$0xff]  ;;  %vm51_vm0 = vcmask 1041408   ;;  %v68_v12 = vlaneseq  ;;  %s269_s25 = smov [#allocation5]  }
  0x14   :  { %v31_v2 = vrot.slane %v27_v0, 6  ;;  %v32_v3 = vrot.slane %v28_v1, 6  ;;  %v37_v4 = vrot.slane %v27_v0, 2  ;;  %v38_v5 = vrot.slane %v28_v1, 2  ;;  %v66_v28 = vld [vmem:[%s345_s1] sm:$0x3] }
  0x15   :  { %v69_v19 = vshrl.u32 %v68_v12, 7  ;;  %v268_v22 = vmov 1966171168   ;;  %s160_s26 = sshll.u32 %s269_s25, 4  ;;  %vm309_vm1 = vcmp.lt.s32.totalorder %v68_v12, 256  ;;  %s161_s26 = int_to_ptr.vmem [resolvable:$true] %s160_s26 }
  0x16   :  { %v35_v6 = vmul.f32 %v31_v2, %v27_v0  ;;  %v36_v7 = vmul.f32 %v32_v3, %v28_v1  ;;  %v41_v8 = vmul.f32 %v37_v4, %v27_v0  ;;  %v42_v9 = vmul.f32 %v38_v5, %v28_v1  ;;  %s217_s1 = scalar_lea.vmem %s161_s26, 32  ;;  %p222_p9 = scmp.lt.s32.totalorder %s161_s26, %s161_s26 }
  0x17   :  { %v84_v23 = vunpack.c.l.s4 %v268_v22  ;;  %v70_v26 = vsub.s32 0, %v69_v19  ;;  %v74_v27 = vsub.s32 1, %v69_v19  ;;  %p218_p8 = scmp.ne.s32.totalorder %s161_s26, %s217_s1  ;;  %p223_p10 = scmp.lt.s32.totalorder %s217_s1, %s217_s1 }
  0x18   :  { %v45_v10 = vrot.slane %v41_v8, 2  ;;  %v46_v11 = vrot.slane %v42_v9, 2 }
  0x19   :  { %v85_v31 = vunpack.c.0.s8 %v84_v23  ;;  %v71_v34 = vrot.slane %v66_v28, %v70_v26  ;;  %v75_v35 = vrot.slane %v66_v28, %v74_v27  ;;  %p224_p11 = por %p223_p10, %p222_p9 }
  0x1a   :  { %v49_v13 = vsub.f32 %v35_v6, %v45_v10  ;;  %v50_v14 = vsub.f32 %v36_v7, %v46_v11 }
  0x1b   :  { %v306_v40 = vsub.s32 %v85_v31, %v69_v19  ;;  %p225_p12 = pnand %p224_p11, %p218_p8 }
  0x1c   :  { %v52_v15 = vsel %vm51_vm0, %v49_v13, 0.0  ;;  %v59_v16 = vsel %vm51_vm0, %v50_v14, 0.0 }
  0x1d   :  { %v53_v17 = vrot.slane %v52_v15, 4  ;;  %v60_v18 = vrot.slane %v59_v16, 4 }
  0x1f   :  { %v54_v20 = vadd.f32 %v53_v17, %v52_v15  ;;  %v61_v21 = vadd.f32 %v60_v18, %v59_v16 }
  0x21   :  { %v55_v24 = vrot.slane %v54_v20, 2  ;;  %v62_v25 = vrot.slane %v61_v21, 2 }
  0x23   :  { %v56_v29 = vadd.f32 %v55_v24, %v54_v20  ;;  %v63_v30 = vadd.f32 %v62_v25, %v61_v21 }
  0x25   :  { %v57_v32 = vrot.slane %v56_v29, 1  ;;  %v64_v33 = vrot.slane %v63_v30, 1 }
  0x27   :  { %v58_v36 = vadd.f32 %v57_v32, %v56_v29  ;;  %v65_v37 = vadd.f32 %v64_v33, %v63_v30 }
  0x29   :  { %v78_v38 = vsub.f32 %v58_v36, %v71_v34  ;;  %v79_v39 = vsub.f32 %v65_v37, %v75_v35 }
  0x2b   :  { %v82_v41 = vcombine.low %v78_v38, %v79_v39  ;;  %v103_v42 = vsub.f32 0.0, %v78_v38  ;;  %v104_v43 = vsub.f32 0.0, %v79_v39 }
  0x2d   :  { %v89_v44 = vrot.slane %v82_v41, %v306_v40  ;;  %v107_v45 = vand.u32 2147483647, %v103_v42  ;;  %v108_v46 = vand.u32 2147483647, %v104_v43 }
  0x2f   :  { %v96_v48 = vrot.slane %v89_v44, %v306_v40  ;;  %v109_v49 = vsub.f32 0.0, %v107_v45  ;;  %v110_v50 = vsub.f32 0.0, %v108_v46 }
  0x31   :  { %102 = vst.msk [vmem:[#allocation5] sm:$0x3] %vm309_vm1, %v96_v48  ;;  %v111_v51 = vmul.f32 1.442695, %v109_v49  ;;  %v113_v52 = vmul.f32 1.442695, %v110_v50 }
  0x32   :  { %228 = shalt.err (!%p225_p12)
}
  0x33   :  { %s229_s29 = scalar_lea.hbm %s346_s2, 32 }
  0x34   :  { %p230_p13 = scmp.ne.s32.totalorder %s346_s2, %s229_s29  ;;  %p233_p0 = scmp.lt.u32.totalorder %s229_s29, %s346_s2 }
  0x36   :  { %p235_p1 = pnand %p233_p0, %p230_p13 }
  0x38   :  { %238 = shalt.err (!%p235_p1)
}
  0x39   :  { %163 = dma.vmem_to_hbm [thread:$0]  %s161_s26, 32, %s346_s2, [#allocation4]   ;;  %187 = vpow2.f32 %v111_v51  ;;  %v105_v1 = vmax.f32 %v103_v42, 0.0  ;;  %v106_v4 = vmax.f32 %v104_v43, 0.0 }
  0x3a   :  { %189 = vpow2.f32 %v113_v52  ;;  %s270_s2 = smov [#allocation6]  }
  0x3b   :  { %s170_s9 = sshll.u32 %s270_s2, 4  ;;  %s171_s9 = int_to_ptr.vmem [resolvable:$true] %s170_s9 }
  0x3c   :  { %s239_s10 = scalar_lea.vmem %s171_s9, 32  ;;  %p244_p3 = scmp.lt.s32.totalorder %s171_s9, %s171_s9 }
  0x3d   :  { %p240_p2 = scmp.ne.s32.totalorder %s171_s9, %s239_s10  ;;  %p245_p4 = scmp.lt.s32.totalorder %s239_s10, %s239_s10 }
  0x3f   :  { %p246_p5 = por %p245_p4, %p244_p3 }
  0x41   :  { %p247_p6 = pnand %p246_p5, %p240_p2 }
  0x43   :  { %v188_v53 = vpop.eup %187 }
  0x44   :  { %v190_v54 = vpop.eup %189  ;;  %v115_v55 = vadd.f32 1.0, %v188_v53  ;;  %v118_v57 = vmul.f32 -0.5, %v188_v53  ;;  %v121_v60 = vand.u32 2147483647, %v188_v53 }
  0x45   :  { %v124_v56 = vadd.f32 1.0, %v190_v54  ;;  %v127_v58 = vmul.f32 -0.5, %v190_v54  ;;  %v130_v62 = vand.u32 2147483647, %v190_v54 }
  0x46   :  { %191 = vlog2.f32 %v115_v55  ;;  %v119_v59 = vadd.f32 1.0, %v118_v57  ;;  %vm122_vm2 = vcmp.lt.f32.partialorder %v121_v60, 0.0004427343 }
  0x47   :  { %193 = vlog2.f32 %v124_v56  ;;  %v128_v61 = vadd.f32 1.0, %v127_v58  ;;  %vm131_vm3 = vcmp.lt.f32.partialorder %v130_v62, 0.0004427343 }
  0x48   :  { %v120_v63 = vmul.f32 %v188_v53, %v119_v59 }
  0x49   :  { %v129_v2 = vmul.f32 %v190_v54, %v128_v61 }
  0x50   :  { %v192_v0 = vpop.eup %191 }
  0x51   :  { %v194_v3 = vpop.eup %193  ;;  %v117_v5 = vmul.f32 0.6931472, %v192_v0 }
  0x52   :  { %v126_v6 = vmul.f32 0.6931472, %v194_v3 }
  0x53   :  { %v123_v7 = vsel %vm122_vm2, %v120_v63, %v117_v5 }
  0x54   :  { %v132_v8 = vsel %vm131_vm3, %v129_v2, %v126_v6  ;;  %v133_v9 = vadd.f32 %v123_v7, %v105_v1 }
  0x55   :  { %v134_v10 = vadd.f32 %v132_v8, %v106_v4 }
  0x57   :  { %v137_v11 = vcombine.low %v133_v9, %v134_v10 }
  0x59   :  { %v144_v12 = vrot.slane %v137_v11, %v306_v40 }
  0x5b   :  { %v151_v13 = vrot.slane %v144_v12, %v306_v40 }
  0x5d   :  { %153 = vst.msk [vmem:[#allocation6] sm:$0x3] %vm309_vm1, %v151_v13 }
  0x5e   :  { %250 = shalt.err (!%p247_p6)
}
  0x5f   :  { %s251_s13 = scalar_lea.hbm %s347_s3, 32 }
  0x60   :  { %p252_p7 = scmp.ne.s32.totalorder %s347_s3, %s251_s13  ;;  %p255_p8 = scmp.lt.u32.totalorder %s251_s13, %s347_s3 }
  0x62   :  { %p257_p9 = pnand %p255_p8, %p252_p7 }
  0x64   :  { %260 = shalt.err (!%p257_p9)
}
  0x65   :  { %173 = dma.vmem_to_hbm [thread:$0]  %s171_s9, 32, %s347_s3, [#allocation7]  }
  0x66   :  { %263 = dma.done.wait [#allocation4], 32  }
  0x67   :  { %264 = vsyncadd [#allocation4], 4294967264 }
  0x68   :  { %265 = dma.done.wait [#allocation7], 32  }
  0x69   :  { %266 = vsyncadd [#allocation7], 4294967264 }
  0x6a   :  { %180 = vsyncpa [#allocation3], 1 }
  0x6b   :  { %181 = vsyncpa [#allocation4], 1 }
  0x6c   :  { %182 = vsyncpa [#allocation7], 1 }

</bundles_post_ra>
